<compile_context>
chip_gen: v5e
topology: v5e:2x2
jax: 0.10.0
libtpu: 0.0.40
codegen_flags: <defaults>
</compile_context>

<pallas_src>
import jax
import jax.numpy as jnp
from jax.experimental import pallas as pl
from jax.experimental.pallas import tpu as pltpu

_HEAD_LANES = 128  # lane-dense fused-head width (n_actions + 1 padded up to a multiple of this)


def _round_up(x, m):
    return (x + m - 1) // m * m


# ----------------------------------------------------------------------------- kernel

def gnn_policy_kernel(inp_ref, wcat_ref, bcat_ref, w1_ref, b1_ref,
                      w2_ref, b2_ref, wh_ref, bh_ref, out_ref):
    """One grid step processes a block of b_blk graphs.

    inp_ref : (N, b_blk, D+E)  inp_ref[i, b] = [node-i feats | edge (i->0) feats] of graph b
    out_ref : (b_blk, head_pad) fused, lane-padded [action_logits | value | zeros]
    """
    n_nodes, b_blk, f = inp_ref.shape
    d = wcat_ref.shape[1]

    # GINEConv aggregation for target node 0 only (only node-0 features feed the heads),
    # as ONE batched matmul over all N*b_blk (source, graph) rows.  The "+ x_i" is folded
    # in via the stacked weight [[I_D], [We]]:
    #   msg = ReLU([x_i | e_{i->0}] @ [[I],[We]] + be) = ReLU(x_i + e_{i->0} @ We + be)
    flat = inp_ref[...].reshape(n_nodes * b_blk, f)        # layout-free: b_blk % 8 == 0
    msg = jnp.maximum(
        jnp.dot(flat, wcat_ref[...], preferred_element_type=jnp.float32) + bcat_ref[...],
        0.0)
    agg = msg.reshape(n_nodes, b_blk, d).sum(axis=0)       # VPU accumulate of N slabs

    # out = MLP(agg + (1 + eps) * x_0), eps = 0 — node-0 rows only.
    h = agg + inp_ref[0, :, :d]                            # node feats sit in lanes 0:D
    h1 = jnp.maximum(
        jnp.dot(h, w1_ref[...], preferred_element_type=jnp.float32) + b1_ref[...], 0.0)
    h2 = jnp.maximum(
        jnp.dot(h1, w2_ref[...], preferred_element_type=jnp.float32) + b2_ref[...], 0.0)

    # fused, lane-padded [logits | value] head -> one unmasked lane-dense store per step
    out_ref[...] = jnp.dot(h2, wh_ref[...], preferred_element_type=jnp.float32) + bh_ref[...]


# ----------------------------------------------------------------------------- glue

def obs_to_node_major(obs, pred_grounding_index, num_ents):
    """Build the node-major [node feats | edge(i->0) feats] slab directly from obs.

    Only the N edges (i -> 0) per graph are materialised (the extractor keeps node 0 only).
    Returns inp of shape (N, B, D+E) plus (D, E).  No separate transpose pass: per-node
    column gathers are stacked straight into node-major order.
    """
    N = num_ents
    assert N > 1, "unary/binary predicate widths are ambiguous when num_ents == 1"
    unary_lo, binary_lo = [], []
    for _, (lo, hi) in pred_grounding_index.items():
        width = hi - lo
        if width == N:                     # unary predicate -> node feature
            unary_lo.append(lo)
        elif width == N * N:               # binary predicate -> edge feature, k = src*N + tgt
            binary_lo.append(lo)
        else:
            raise ValueError(f"predicate width {width} is neither N nor N*N")
    per_node = []
    for i in range(N):
        cols = [lo + i for lo in unary_lo] + [lo + i * N for lo in binary_lo]
        per_node.append(jnp.take(obs, jnp.asarray(cols, dtype=jnp.int32), axis=1))
    inp = jnp.stack(per_node, axis=0).astype(jnp.float32)  # (N, B, D+E)
    return inp, len(unary_lo), len(binary_lo)


def gnn_policy_forward(obs, params, pred_grounding_index, num_ents, gnn_hidden,
                       n_actions, max_block=1024, min_grid_steps=1):
    """Full GNNPolicy forward: returns (action_logits (B, n_actions), values (B, 1)).

    min_grid_steps=2 is recommended on v7x (two TensorCores) for large batches.
    """
    we, be, w1, b1, w2, b2, wa, ba, wv, bv = params
    inp, node_dim, edge_dim = obs_to_node_major(obs, pred_grounding_index, num_ents)
    N, B, F = inp.shape
    D, E, H = node_dim, edge_dim, gnn_hidden
    n_head = n_actions + 1
    head_pad = _round_up(n_head, _HEAD_LANES)

    # stacked GINE edge-linear weight: [x | e] @ [[I],[We]] + be  =  x + e @ We + be
    wcat = jnp.concatenate([jnp.eye(D, dtype=jnp.float32), we.astype(jnp.float32)], axis=0)
    bcat = be.astype(jnp.float32)                                         # (1, D)

    # fused, lane-padded [action | value] head weights (H, head_pad)
    wh = (jnp.zeros((H, head_pad), jnp.float32)
          .at[:, :n_actions].set(wa).at[:, n_actions:n_head].set(wv))
    bh = (jnp.zeros((1, head_pad), jnp.float32)
          .at[:, :n_actions].set(ba).at[:, n_actions:n_head].set(bv))

    # adaptive block size: fewest grid steps that respect max_block, rows rounded to 8
    # (avoids e.g. B=300 padding to 512 graphs).
    n_steps = max(-(-B // max_block), min_grid_steps)
    b_blk = _round_up(-(-B // n_steps), 8)
    b_pad = n_steps * b_blk
    if b_pad != B:
        inp = jnp.pad(inp, ((0, 0), (0, b_pad - B), (0, 0)))

    out = pl.pallas_call(
        gnn_policy_kernel,
        out_shape=jax.ShapeDtypeStruct((b_pad, head_pad), jnp.float32),
        grid_spec=pltpu.PrefetchScalarGridSpec(
            num_scalar_prefetch=0,
            grid=(n_steps,),
            in_specs=[
                pl.BlockSpec((N, b_blk, F), lambda g: (0, g, 0)),   # node-major [x | e] slab
                pl.BlockSpec((D + E, D), lambda g: (0, 0)),         # stacked GINE lin [[I],[We]]
                pl.BlockSpec((1, D), lambda g: (0, 0)),             # GINE edge lin bias
                pl.BlockSpec((D, H), lambda g: (0, 0)),             # MLP W1^T
                pl.BlockSpec((1, H), lambda g: (0, 0)),             # MLP b1
                pl.BlockSpec((H, H), lambda g: (0, 0)),             # MLP W2^T
                pl.BlockSpec((1, H), lambda g: (0, 0)),             # MLP b2
                pl.BlockSpec((H, head_pad), lambda g: (0, 0)),      # fused head W^T (lane-padded)
                pl.BlockSpec((1, head_pad), lambda g: (0, 0)),      # fused head b   (lane-padded)
            ],
            out_specs=pl.BlockSpec((b_blk, head_pad), lambda g: (g, 0)),
        ),
        compiler_params=pltpu.CompilerParams(
            dimension_semantics=("parallel",),
            vmem_limit_bytes=32 * 1024 * 1024,
        ),
    )(inp, wcat, bcat, w1, b1, w2, b2, wh, bh)

    out = out[:B]
    return out[:, :n_actions], out[:, n_actions:n_head]


# ----------------------------------------------------------------------------- reference

def _obs2domain_full(obs, pred_grounding_index, num_ents):
    B = obs.shape[0]
    N = num_ents
    unary, binary = [], []
    for _, (lo, hi) in pred_grounding_index.items():
        width = hi - lo
        if width == N:
            unary.append(obs[:, lo:hi, None])
        elif width == N * N:
            binary.append(obs[:, lo:hi].reshape(B, N, N)[..., None])
        else:
            raise ValueError(f"predicate width {width} is neither N nor N*N")
    nodes = jnp.concatenate(unary, axis=-1).astype(jnp.float32)                      # (B, N, D)
    edges = jnp.concatenate(binary, axis=-1).reshape(B, N * N, -1).astype(jnp.float32)
    return nodes, edges


def reference(obs, params, pred_grounding_index, num_ents, gnn_hidden, n_actions):
    """Pure-JAX reference of the PyTorch GNNPolicy forward (full GINEConv, all nodes)."""
    we, be, w1, b1, w2, b2, wa, ba, wv, bv = params
    nodes, edges = _obs2domain_full(obs, pred_grounding_index, num_ents)
    B, N, D = nodes.shape
    lin_e = (edges @ we + be).reshape(B, N, N, D)          # [b, src, tgt, d]
    msg = jnp.maximum(nodes[:, :, None, :] + lin_e, 0.0)   # broadcast source feats over tgt
    agg = msg.sum(axis=1)                                  # sum over sources -> (B, N, D)
    h = agg + nodes
    h1 = jnp.maximum(h @ w1 + b1, 0.0)
    h2 = jnp.maximum(h1 @ w2 + b2, 0.0)
    feats = h2[:, 0, :]                                    # node 0 of each graph
    return feats @ wa + ba, feats @ wv + bv


# ----------------------------------------------------------------------------- demo

if __name__ == "__main__":
    B = 2
    num_ents = 4
    gnn_hidden = 32
    n_actions = 3            # Discrete(3); gym action-space introspection is host-side config

    # unary preds (width N) -> node_dim = 3 ; binary preds (width N*N) -> edge_dim = 2
    pred_grounding_index = {
        "IsAgent": (0, 4),
        "Near":    (4, 20),
        "IsFast":  (20, 24),
        "Sees":    (24, 40),
        "IsCar":   (40, 44),
    }
    obs_dim = 44
    node_dim, edge_dim = 3, 2

    key = jax.random.PRNGKey(0)
    (k_obs, k_we, k_be, k_w1, k_b1, k_w2, k_b2,
     k_wa, k_ba, k_wv, k_bv) = jax.random.split(key, 11)

    obs = jax.random.normal(k_obs, (B, obs_dim), dtype=jnp.float32)

    # deterministic synthetic parameters (weights stored transposed for x @ W)
    we = 0.2 * jax.random.normal(k_we, (edge_dim, node_dim), dtype=jnp.float32)
    be = 0.1 * jax.random.normal(k_be, (1, node_dim), dtype=jnp.float32)
    w1 = 0.2 * jax.random.normal(k_w1, (node_dim, gnn_hidden), dtype=jnp.float32)
    b1 = 0.1 * jax.random.normal(k_b1, (1, gnn_hidden), dtype=jnp.float32)
    w2 = 0.2 * jax.random.normal(k_w2, (gnn_hidden, gnn_hidden), dtype=jnp.float32)
    b2 = 0.1 * jax.random.normal(k_b2, (1, gnn_hidden), dtype=jnp.float32)
    wa = 0.2 * jax.random.normal(k_wa, (gnn_hidden, n_actions), dtype=jnp.float32)
    ba = 0.1 * jax.random.normal(k_ba, (1, n_actions), dtype=jnp.float32)
    wv = 0.2 * jax.random.normal(k_wv, (gnn_hidden, 1), dtype=jnp.float32)
    bv = 0.1 * jax.random.normal(k_bv, (1, 1), dtype=jnp.float32)
    params = (we, be, w1, b1, w2, b2, wa, ba, wv, bv)

    logits, values = gnn_policy_forward(obs, params, pred_grounding_index,
                                        num_ents, gnn_hidden, n_actions)
    logits = jax.block_until_ready(logits)
    values = jax.block_until_ready(values)

    ref_logits, ref_values = reference(obs, params, pred_grounding_index,
                                       num_ents, gnn_hidden, n_actions)

    assert logits.shape == (B, n_actions), logits.shape
    assert values.shape == (B, 1), values.shape
    assert jnp.allclose(logits, ref_logits, atol=1e-4, rtol=1e-4), (logits, ref_logits)
    assert jnp.allclose(values, ref_values, atol=1e-4, rtol=1e-4), (values, ref_values)

    print("KERNEL_OK")
</pallas_src>

<mosaic_0001>
module attributes {stable_mosaic.version = 11 : i64} {
  func.func @gnn_policy_kernel(%arg0: i32, %arg1: memref<4x8x5xf32, #tpu.memory_space<vmem>>, %arg2: memref<5x3xf32, #tpu.memory_space<vmem>>, %arg3: memref<1x3xf32, #tpu.memory_space<vmem>>, %arg4: memref<3x32xf32, #tpu.memory_space<vmem>>, %arg5: memref<1x32xf32, #tpu.memory_space<vmem>>, %arg6: memref<32x32xf32, #tpu.memory_space<vmem>>, %arg7: memref<1x32xf32, #tpu.memory_space<vmem>>, %arg8: memref<32x128xf32, #tpu.memory_space<vmem>>, %arg9: memref<1x128xf32, #tpu.memory_space<vmem>>, %arg10: memref<8x128xf32, #tpu.memory_space<vmem>>) attributes {dimension_semantics = [#tpu.dimension_semantics<parallel>], iteration_bounds = array<i64: 1>, scalar_prefetch = 0 : i64, scratch_operands = 0 : i64, tpu.core_type = #tpu.core_type<tc>, window_params = [{transform_indices = @transform_0, window_bounds = array<i64: 4, 8, 5>}, {pipeline_mode = #tpu.pipeline_mode<synchronous>, transform_indices = @transform_1, window_bounds = array<i64: 5, 3>}, {pipeline_mode = #tpu.pipeline_mode<synchronous>, transform_indices = @transform_2, window_bounds = array<i64: 1, 3>}, {pipeline_mode = #tpu.pipeline_mode<synchronous>, transform_indices = @transform_3, window_bounds = array<i64: 3, 32>}, {pipeline_mode = #tpu.pipeline_mode<synchronous>, transform_indices = @transform_4, window_bounds = array<i64: 1, 32>}, {pipeline_mode = #tpu.pipeline_mode<synchronous>, transform_indices = @transform_5, window_bounds = array<i64: 32, 32>}, {pipeline_mode = #tpu.pipeline_mode<synchronous>, transform_indices = @transform_6, window_bounds = array<i64: 1, 32>}, {pipeline_mode = #tpu.pipeline_mode<synchronous>, transform_indices = @transform_7, window_bounds = array<i64: 32, 128>}, {pipeline_mode = #tpu.pipeline_mode<synchronous>, transform_indices = @transform_8, window_bounds = array<i64: 1, 128>}, {transform_indices = @transform_9, window_bounds = array<i64: 8, 128>}]} {
    %c0 = arith.constant 0 : index
    %c0_0 = arith.constant 0 : index
    %c0_1 = arith.constant 0 : index
    %0 = vector.load %arg1[%c0, %c0_0, %c0_1] : memref<4x8x5xf32, #tpu.memory_space<vmem>>, vector<4x8x5xf32>
    %1 = vector.shape_cast %0 : vector<4x8x5xf32> to vector<32x5xf32>
    %c0_2 = arith.constant 0 : index
    %c0_3 = arith.constant 0 : index
    %2 = vector.load %arg2[%c0_2, %c0_3] : memref<5x3xf32, #tpu.memory_space<vmem>>, vector<5x3xf32>
    %cst = arith.constant dense<0.000000e+00> : vector<32x3xf32>
    %3 = tpu.matmul %1, %2, %cst {dimension_numbers = #tpu.dot_dimension_numbers<[1], [0], [0], [1], [0, 0, 1, 1], [], []>} : vector<32x5xf32>, vector<5x3xf32>, vector<32x3xf32> -> vector<32x3xf32>
    %c0_4 = arith.constant 0 : index
    %c0_5 = arith.constant 0 : index
    %4 = vector.load %arg3[%c0_4, %c0_5] : memref<1x3xf32, #tpu.memory_space<vmem>>, vector<1x3xf32>
    %5 = vector.broadcast %4 : vector<1x3xf32> to vector<32x3xf32>
    %6 = arith.addf %3, %5 : vector<32x3xf32>
    %cst_6 = arith.constant 0.000000e+00 : f32
    %7 = vector.broadcast %cst_6 : f32 to vector<32x3xf32>
    %8 = arith.maximumf %6, %7 : vector<32x3xf32>
    %9 = vector.shape_cast %8 : vector<32x3xf32> to vector<4x8x3xf32>
    %cst_7 = arith.constant dense<0.000000e+00> : vector<8x3xf32>
    %10 = vector.multi_reduction <add>, %9, %cst_7 [0] : vector<4x8x3xf32> to vector<8x3xf32>
    %c0_8 = arith.constant 0 : index
    %c0_9 = arith.constant 0 : index
    %c0_10 = arith.constant 0 : index
    %11 = vector.load %arg1[%c0_8, %c0_9, %c0_10] : memref<4x8x5xf32, #tpu.memory_space<vmem>>, vector<1x8x3xf32>
    %12 = vector.shape_cast %11 : vector<1x8x3xf32> to vector<8x3xf32>
    %13 = arith.addf %10, %12 : vector<8x3xf32>
    %c0_11 = arith.constant 0 : index
    %c0_12 = arith.constant 0 : index
    %14 = vector.load %arg4[%c0_11, %c0_12] : memref<3x32xf32, #tpu.memory_space<vmem>>, vector<3x32xf32>
    %cst_13 = arith.constant dense<0.000000e+00> : vector<8x32xf32>
    %15 = tpu.matmul %13, %14, %cst_13 {dimension_numbers = #tpu.dot_dimension_numbers<[1], [0], [0], [1], [0, 0, 1, 1], [], []>} : vector<8x3xf32>, vector<3x32xf32>, vector<8x32xf32> -> vector<8x32xf32>
    %c0_14 = arith.constant 0 : index
    %c0_15 = arith.constant 0 : index
    %16 = vector.load %arg5[%c0_14, %c0_15] : memref<1x32xf32, #tpu.memory_space<vmem>>, vector<1x32xf32>
    %17 = vector.broadcast %16 : vector<1x32xf32> to vector<8x32xf32>
    %18 = arith.addf %15, %17 : vector<8x32xf32>
    %cst_16 = arith.constant 0.000000e+00 : f32
    %19 = vector.broadcast %cst_16 : f32 to vector<8x32xf32>
    %20 = arith.maximumf %18, %19 : vector<8x32xf32>
    %c0_17 = arith.constant 0 : index
    %c0_18 = arith.constant 0 : index
    %21 = vector.load %arg6[%c0_17, %c0_18] : memref<32x32xf32, #tpu.memory_space<vmem>>, vector<32x32xf32>
    %cst_19 = arith.constant dense<0.000000e+00> : vector<8x32xf32>
    %22 = tpu.matmul %20, %21, %cst_19 {dimension_numbers = #tpu.dot_dimension_numbers<[1], [0], [0], [1], [0, 0, 1, 1], [], []>} : vector<8x32xf32>, vector<32x32xf32>, vector<8x32xf32> -> vector<8x32xf32>
    %c0_20 = arith.constant 0 : index
    %c0_21 = arith.constant 0 : index
    %23 = vector.load %arg7[%c0_20, %c0_21] : memref<1x32xf32, #tpu.memory_space<vmem>>, vector<1x32xf32>
    %24 = vector.broadcast %23 : vector<1x32xf32> to vector<8x32xf32>
    %25 = arith.addf %22, %24 : vector<8x32xf32>
    %cst_22 = arith.constant 0.000000e+00 : f32
    %26 = vector.broadcast %cst_22 : f32 to vector<8x32xf32>
    %27 = arith.maximumf %25, %26 : vector<8x32xf32>
    %c0_23 = arith.constant 0 : index
    %c0_24 = arith.constant 0 : index
    %28 = vector.load %arg8[%c0_23, %c0_24] : memref<32x128xf32, #tpu.memory_space<vmem>>, vector<32x128xf32>
    %cst_25 = arith.constant dense<0.000000e+00> : vector<8x128xf32>
    %29 = tpu.matmul %27, %28, %cst_25 {dimension_numbers = #tpu.dot_dimension_numbers<[1], [0], [0], [1], [0, 0, 1, 1], [], []>} : vector<8x32xf32>, vector<32x128xf32>, vector<8x128xf32> -> vector<8x128xf32>
    %c0_26 = arith.constant 0 : index
    %c0_27 = arith.constant 0 : index
    %30 = vector.load %arg9[%c0_26, %c0_27] : memref<1x128xf32, #tpu.memory_space<vmem>>, vector<1x128xf32>
    %31 = vector.broadcast %30 : vector<1x128xf32> to vector<8x128xf32>
    %32 = arith.addf %29, %31 : vector<8x128xf32>
    %c0_28 = arith.constant 0 : index
    %c0_29 = arith.constant 0 : index
    %33 = vector.load %arg10[%c0_28, %c0_29] : memref<8x128xf32, #tpu.memory_space<vmem>>, vector<8x128xf32>
    tpu.vector_store %arg10[%c0_28, %c0_29], %32 {strides = array<i32>} : memref<8x128xf32, #tpu.memory_space<vmem>>, vector<8x128xf32>,
    return
  }
  func.func @transform_0(%arg0: i32) -> (i32, i32, i32) {
    %c0_i32 = arith.constant 0 : i32
    %c0_i32_0 = arith.constant 0 : i32
    %c0_i32_1 = arith.constant 0 : i32
    return %c0_i32, %arg0, %c0_i32_0 : i32, i32, i32
  }
  func.func @transform_1(%arg0: i32) -> (i32, i32) {
    %c0_i32 = arith.constant 0 : i32
    %c0_i32_0 = arith.constant 0 : i32
    %c0_i32_1 = arith.constant 0 : i32
    return %c0_i32, %c0_i32_0 : i32, i32
  }
  func.func @transform_2(%arg0: i32) -> (i32, i32) {
    %c0_i32 = arith.constant 0 : i32
    %c0_i32_0 = arith.constant 0 : i32
    %c0_i32_1 = arith.constant 0 : i32
    return %c0_i32, %c0_i32_0 : i32, i32
  }
  func.func @transform_3(%arg0: i32) -> (i32, i32) {
    %c0_i32 = arith.constant 0 : i32
    %c0_i32_0 = arith.constant 0 : i32
    %c0_i32_1 = arith.constant 0 : i32
    return %c0_i32, %c0_i32_0 : i32, i32
  }
  func.func @transform_4(%arg0: i32) -> (i32, i32) {
    %c0_i32 = arith.constant 0 : i32
    %c0_i32_0 = arith.constant 0 : i32
    %c0_i32_1 = arith.constant 0 : i32
    return %c0_i32, %c0_i32_0 : i32, i32
  }
  func.func @transform_5(%arg0: i32) -> (i32, i32) {
    %c0_i32 = arith.constant 0 : i32
    %c0_i32_0 = arith.constant 0 : i32
    %c0_i32_1 = arith.constant 0 : i32
    return %c0_i32, %c0_i32_0 : i32, i32
  }
  func.func @transform_6(%arg0: i32) -> (i32, i32) {
    %c0_i32 = arith.constant 0 : i32
    %c0_i32_0 = arith.constant 0 : i32
    %c0_i32_1 = arith.constant 0 : i32
    return %c0_i32, %c0_i32_0 : i32, i32
  }
  func.func @transform_7(%arg0: i32) -> (i32, i32) {
    %c0_i32 = arith.constant 0 : i32
    %c0_i32_0 = arith.constant 0 : i32
    %c0_i32_1 = arith.constant 0 : i32
    return %c0_i32, %c0_i32_0 : i32, i32
  }
  func.func @transform_8(%arg0: i32) -> (i32, i32) {
    %c0_i32 = arith.constant 0 : i32
    %c0_i32_0 = arith.constant 0 : i32
    %c0_i32_1 = arith.constant 0 : i32
    return %c0_i32, %c0_i32_0 : i32, i32
  }
  func.func @transform_9(%arg0: i32) -> (i32, i32) {
    %c0_i32 = arith.constant 0 : i32
    %c0_i32_0 = arith.constant 0 : i32
    return %arg0, %c0_i32 : i32, i32
  }
}

</mosaic_0001>

<bundles_post_ra>
// kernel: tpu_custom_call.1
= control target key start
LH: loop header
LB: loop body
LE: loop exit
PB: predicated region body
PF: predicated region fallthrough
CT: control target
= control target key end

     0   :  { %14 = vsyncpa [#allocation3], 0  ;;  %s409_s0 = inlined_call_operand.vmem [shape: f32[4,8,5], index: 0, kind: input, shape index: {}]   ;;  %s410_s1 = inlined_call_operand.vmem [shape: f32[5,3], index: 1, kind: input, shape index: {}]   ;;  %s411_s2 = inlined_call_operand.vmem [shape: f32[1,3], index: 2, kind: input, shape index: {}]   ;;  %s412_s3 = inlined_call_operand.hbm [shape: f32[3,32], index: 3, kind: input, shape index: {}]   ;;  %s413_s4 = inlined_call_operand.vmem [shape: f32[1,32], index: 4, kind: input, shape index: {}]   ;;  %s414_s5 = inlined_call_operand.vmem [shape: f32[32,32], index: 5, kind: input, shape index: {}]   ;;  %s415_s6 = inlined_call_operand.vmem [shape: f32[1,32], index: 6, kind: input, shape index: {}]   ;;  %s416_s7 = inlined_call_operand.vmem [shape: f32[32,128], index: 7, kind: input, shape index: {}]   ;;  %s417_s8 = inlined_call_operand.vmem [shape: f32[1,128], index: 8, kind: input, shape index: {}]   ;;  %s418_s9 = inlined_call_operand.hbm [shape: f32[8,128], index: 9, kind: output, shape index: {}]  }
   0x1   :  { %15 = vsyncpa [#allocation4], 0  ;;  %s27_s11 = sshll.u32 %s412_s3, 4  ;;  %s300_s12 = smov [#allocation2]   ;;  %s28_s11 = int_to_ptr.hbm [resolvable:$true] %s27_s11 }
   0x2   :  { %s29_s13 = sshll.u32 %s300_s12, 4  ;;  %s30_s13 = int_to_ptr.vmem [resolvable:$true] %s29_s13 }
   0x3   :  { %32 = dma.hbm_to_vmem [thread:$0]  %s28_s11, 64, %s30_s13, [#allocation3]  }
   0x4   :  { %296 = dma.done.wait [#allocation3], 64  }
   0x5   :  { %297 = vsyncadd [#allocation3], 4294967232  ;;  %vm69_vm0 = vcmask 1044480   ;;  %vm56_vm1 = vcmask 39936   ;;  %v51_v0 = vld [vmem:[%s410_s1] sm:$0x1f] }
   0x6   :  { %v47_v1 = vld [vmem:[%s409_s0] sm:$0xff]  ;;  %v50_v2 = vld [vmem:[%s409_s0 + $0x18] sm:$0xff]  ;;  %231 = vmatpush.msk.msra.mxu0 %vm69_vm0, %v51_v0  ;;  %241 = vmatpush.msk.msra.mxu2 %vm69_vm0, %v51_v0  ;;  %v49_v3 = vld [vmem:[%s409_s0 + $0x10] sm:$0xff]  ;;  %vm124_vm2 = vcmask 1042432   ;;  %vm106_vm3 = vcmask 23552   ;;  %vm157_vm4 = vcmask 261120  }
   0x7   :  { %232 = vmatmul.msk.f32.vlgmr.msra.gmra.mxu0 %vm56_vm1, %v47_v1  ;;  %235 = vmatmul.msk.f32.vlgmr.msra.gmra.mxu2 %vm56_vm1, %v50_v2  ;;  %v48_v4 = vld [vmem:[%s409_s0 + $0x8] sm:$0xff]  ;;  %v116_v5 = vld [vmem:[#allocation2] sm:$0x7]  ;;  %v152_v6 = vld [vmem:[%s414_s5 + $0x18] sm:$0xff]  ;;  %s301_s20 = smov [#allocation5]   ;;  %s221_s23 = sshll.u32 %s418_s9, 4  ;;  %s222_s23 = int_to_ptr.hbm [resolvable:$true] %s221_s23 }
   0x8   :  { %240 = vmatpush.msk.msra.mxu1 %vm69_vm0, %v51_v0  ;;  %v151_v7 = vld [vmem:[%s414_s5 + $0x10] sm:$0xff]  ;;  %173 = vmatpush.msrb.mxu2 %v152_v6  ;;  %v244_v9 = vld [vmem:[%s411_s2] ss:$0 sm:$0xff]  ;;  %v150_v29 = vld [vmem:[%s414_s5 + $0x8] sm:$0xff]  ;;  %s219_s21 = sshll.u32 %s301_s20, 4  ;;  %s220_s21 = int_to_ptr.vmem [resolvable:$true] %s219_s21 }
   0x9   :  { %234 = vmatmul.msk.f32.vlgmr.msra.gmra.mxu1 %vm56_vm1, %v49_v3  ;;  %v149_v30 = vld [vmem:[%s414_s5] sm:$0xff]  ;;  %v185_v31 = vld [vmem:[%s416_s7 + $0x18] sm:$0xff]  ;;  %v184_v36 = vld [vmem:[%s416_s7 + $0x10] sm:$0xff] }
   0xa   :  { %236 = vmatpush.msk.msrb.mxu1 %vm124_vm2, %v116_v5  ;;  %174 = vmatpush.msrb.mxu2 %v151_v7  ;;  %v245_v32 = vld [vmem:[%s413_s4] ss:$0 sm:$0xff]  ;;  %v183_v37 = vld [vmem:[%s416_s7 + $0x8] sm:$0xff] }
   0xb   :  { %205 = vmatpush.msra.mxu3 %v185_v31  ;;  %v182_v38 = vld [vmem:[%s416_s7] sm:$0xff] }
   0xc   :  { %175 = vmatpush.msrb.mxu2 %v150_v29  ;;  %v246_v39 = vld [vmem:[%s415_s6] ss:$0 sm:$0xff] }
   0xd   :  { %206 = vmatpush.msra.mxu3 %v184_v36  ;;  %v247_v43 = vld [vmem:[%s417_s8] ss:$0 sm:$0xff] }
   0xe   :  { %176 = vmatpush.msrb.mxu2 %v149_v30 }
   0xf   :  { %233 = vmatmul.msk.f32.gmra.mxu0 %vm56_vm1, %v48_v4  ;;  %207 = vmatpush.msra.mxu3 %v183_v37 }
  0x11   :  { %208 = vmatpush.msra.mxu3 %v182_v38 }
  0x84   :  { %v90_v8 = vpop.f32.mrf.mxu0 }
  0x85   :  { %v91_v11 = vadd.f32 %v244_v9, %v90_v8 }
  0x86   :  { %v96_v10 = vpop.f32.mrf.mxu1 }
  0x87   :  { %v97_v12 = vadd.f32 %v244_v9, %v96_v10  ;;  %v102_v16 = vmax.f32 %v91_v11, 0.0 }
  0x89   :  { %v104_v18 = vmax.f32 %v97_v12, 0.0  ;;  %v107_v21 = vsel %vm106_vm3, %v102_v16, 0.0 }
  0x8a   :  { %v99_v13 = vpop.f32.mrf.mxu2 }
  0x8b   :  { %v100_v14 = vadd.f32 %v244_v9, %v99_v13  ;;  %v110_v23 = vsel %vm106_vm3, %v104_v18, 0.0 }
  0x8c   :  { %v93_v15 = vpop.f32.mrf.mxu0 }
  0x8d   :  { %v94_v17 = vadd.f32 %v244_v9, %v93_v15  ;;  %v105_v20 = vmax.f32 %v100_v14, 0.0 }
  0x8f   :  { %v103_v19 = vmax.f32 %v94_v17, 0.0  ;;  %v112_v25 = vsel %vm106_vm3, %v105_v20, 0.0 }
  0x91   :  { %v108_v22 = vsel %vm106_vm3, %v103_v19, 0.0 }
  0x92   :  { %v109_v24 = vadd.f32 %v108_v22, %v107_v21 }
  0x94   :  { %v111_v26 = vadd.f32 %v110_v23, %v109_v24 }
  0x96   :  { %v113_v27 = vadd.f32 %v112_v25, %v111_v26 }
  0x98   :  { %v115_v28 = vadd.f32 %v113_v27, %v47_v1 }
  0x9a   :  { %237 = vmatmul.msk.f32.vlgmr.msrb.gmra.mxu1 %vm106_vm3, %v115_v28 }
 0x117   :  { %v145_v33 = vpop.f32.mrf.mxu1 }
 0x118   :  { %v146_v34 = vadd.f32 %v245_v32, %v145_v33 }
 0x11a   :  { %v148_v35 = vmax.f32 %v146_v34, 0.0 }
 0x11c   :  { %238 = vmatmul.msk.f32.vlgmr.msrb.gmra.mxu2 %vm157_vm4, %v148_v35 }
 0x19f   :  { %v178_v40 = vpop.f32.mrf.mxu2 }
 0x1a0   :  { %v179_v41 = vadd.f32 %v246_v39, %v178_v40 }
 0x1a2   :  { %v181_v42 = vmax.f32 %v179_v41, 0.0 }
 0x1a4   :  { %239 = vmatmul.msk.f32.vlgmr.msra.gmra.mxu3 %vm157_vm4, %v181_v42 }
 0x227   :  { %v210_v44 = vpop.f32.mrf.mxu3 }
 0x228   :  { %v211_v45 = vadd.f32 %v247_v43, %v210_v44 }
 0x22a   :  { %213 = vst [vmem:[#allocation5] sm:$0xff] %v211_v45 }
 0x22b   :  { %224 = dma.vmem_to_hbm [thread:$0]  %s220_s21, 128, %s222_s23, [#allocation4]  }
 0x22c   :  { %298 = dma.done.wait [#allocation4], 128  }
 0x22d   :  { %299 = vsyncadd [#allocation4], 4294967168 }
 0x22e   :  { %229 = vsyncpa [#allocation3], 1 }
 0x22f   :  { %230 = vsyncpa [#allocation4], 1 }

</bundles_post_ra>
